<compile_context>
chip_gen: v7x
topology: tpu7x:2x2x1
jax: 0.10.0
libtpu: 0.0.40
codegen_flags: <defaults>
</compile_context>

<pallas_src>
import functools

import jax
import jax.numpy as jnp
from jax import lax
from jax.experimental import pallas as pl
from jax.experimental.pallas import tpu as pltpu

_EPS = 1e-5
_LANE = 128
_ROW_ALIGN = 256
_RESIDENT_X_BUDGET = 12 * 1024 * 1024   # conservative across v5e/v6e/v7x (64 MiB VMEM)


def _round_up(v, m):
    return ((v + m - 1) // m) * m


def _pick_tile(n, candidates):
    for t in candidates:
        if n % t == 0:
            return t
    return n


# ------------------------------------------------------------------------------
# Kernels 1a/1b: base_transform == per-feature (column-wise) standardization.
# Tiled two-pass version (column sum / sumsq accumulated across row tiles, then a
# parallel apply pass) so it never needs the whole array resident in VMEM.
# NOTE: one-pass sum/sumsq variance (clamped at 0) -- adequate for standardized-ish
# inputs, loses precision if feature means are huge relative to their std.
# ------------------------------------------------------------------------------
def col_stats_kernel(x_ref, sum_ref, sq_ref):
    @pl.when(pl.program_id(0) == 0)
    def _():
        sum_ref[...] = jnp.zeros_like(sum_ref)
        sq_ref[...] = jnp.zeros_like(sq_ref)

    x = x_ref[...]
    sum_ref[...] += jnp.sum(x, axis=0, keepdims=True)
    sq_ref[...] += jnp.sum(x * x, axis=0, keepdims=True)


def standardize_apply_kernel(x_ref, sum_ref, sq_ref, of_ref, ob_ref,
                             *, n_valid, n_pad, tm):
    inv = jnp.float32(1.0 / n_valid)
    mean = sum_ref[...] * inv
    var = jnp.maximum(sq_ref[...] * inv - mean * mean, 0.0)
    y = (x_ref[...] - mean) * lax.rsqrt(var + _EPS)
    if n_pad != n_valid:
        # keep zero-padded rows exactly zero so they stay inert downstream
        row = pl.program_id(0) * tm + lax.broadcasted_iota(jnp.int32, y.shape, 0)
        y = jnp.where(row < n_valid, y, 0.0)
    of_ref[...] = y
    ob_ref[...] = y.astype(jnp.bfloat16)


def standardize(x_p, *, n_valid):
    n_pad, f_pad = x_p.shape
    tm = _pick_tile(n_pad, (1024, 512, 256))
    grid = (n_pad // tm,)

    colsum, colsq = pl.pallas_call(
        col_stats_kernel,
        out_shape=(jax.ShapeDtypeStruct((1, f_pad), jnp.float32),
                   jax.ShapeDtypeStruct((1, f_pad), jnp.float32)),
        grid_spec=pltpu.PrefetchScalarGridSpec(
            num_scalar_prefetch=0, grid=grid,
            in_specs=[pl.BlockSpec((tm, f_pad), lambda i: (i, 0))],
            out_specs=[pl.BlockSpec((1, f_pad), lambda i: (0, 0)),
                       pl.BlockSpec((1, f_pad), lambda i: (0, 0))]),
        compiler_params=pltpu.CompilerParams(
            dimension_semantics=("arbitrary",)),
    )(x_p)

    kern = functools.partial(standardize_apply_kernel,
                             n_valid=n_valid, n_pad=n_pad, tm=tm)
    x_f32, x_bf16 = pl.pallas_call(
        kern,
        out_shape=(jax.ShapeDtypeStruct((n_pad, f_pad), jnp.float32),
                   jax.ShapeDtypeStruct((n_pad, f_pad), jnp.bfloat16)),
        grid_spec=pltpu.PrefetchScalarGridSpec(
            num_scalar_prefetch=0, grid=grid,
            in_specs=[pl.BlockSpec((tm, f_pad), lambda i: (i, 0)),
                      pl.BlockSpec((1, f_pad), lambda i: (0, 0)),
                      pl.BlockSpec((1, f_pad), lambda i: (0, 0))],
            out_specs=[pl.BlockSpec((tm, f_pad), lambda i: (i, 0)),
                       pl.BlockSpec((tm, f_pad), lambda i: (i, 0))]),
        compiler_params=pltpu.CompilerParams(
            dimension_semantics=("parallel",)),
    )(x_p, colsum, colsq)
    return x_f32, x_bf16


# ------------------------------------------------------------------------------
# Kernel 2 (fused ConcatMP hot path), grid = (row tiles i [parallel], k tiles):
#   acc += adj[i,k] @ x_bf16[k]               (bf16 MXU inputs, f32 accumulator)
#   on last k:  h = instance-norm([x[i] | acc])  (padded cols re-zeroed)
#               stored ONCE in bf16; per-row-tile gram partial (f32 MXU) + colsum.
# ------------------------------------------------------------------------------
def mp_concat_gram_kernel(adj_ref, xk_ref, xi_ref,
                          h_ref, gram_ref, colsum_ref,
                          acc_ref, *, f_valid, f_pad, tk, x_resident):
    k = pl.program_id(1)

    @pl.when(k == 0)
    def _():
        acc_ref[...] = jnp.zeros_like(acc_ref)

    if x_resident:
        xk = xk_ref[pl.ds(pl.multiple_of(k * tk, tk), tk), :]
    else:
        xk = xk_ref[...]
    acc_ref[...] += jnp.dot(adj_ref[...], xk, preferred_element_type=jnp.float32)

    @pl.when(k == pl.num_programs(1) - 1)
    def _():
        h = jnp.concatenate([xi_ref[...], acc_ref[...]], axis=1)  # (tm, 2*f_pad) f32

        # mp_instance_normalization: per-node (row) z-score over the 2*f_valid real
        # columns (padded rows/cols are zero, so one-pass sums are exact; zero rows
        # normalize to exactly zero).
        inv = jnp.float32(1.0 / (2 * f_valid))
        r_mean = jnp.sum(h, axis=1, keepdims=True) * inv
        r_var = jnp.maximum(
            jnp.sum(h * h, axis=1, keepdims=True) * inv - r_mean * r_mean, 0.0)
        hn = (h - r_mean) * lax.rsqrt(r_var + _EPS)

        if f_valid != f_pad:
            # re-zero the padded columns so they stay inert in gram / projection
            col = lax.broadcasted_iota(jnp.int32, (1, 2 * f_pad), 1)
            valid = (col < f_valid) | ((col >= f_pad) & (col < f_pad + f_valid))
            hn = jnp.where(valid, hn, 0.0)

        h_ref[...] = hn.astype(jnp.bfloat16)          # single lane-dense bf16 store

        # per-row-tile partials (summed in the glue) -> row axis can be "parallel"
        gram_ref[0] = lax.dot_general(
            hn, hn, (((0,), (0,)), ((), ())), preferred_element_type=jnp.float32)
        colsum_ref[0] = jnp.sum(hn, axis=0, keepdims=True)


# ------------------------------------------------------------------------------
# Kernel 3: projection  x_new = h @ W - b   (column norm folded into W, b);
# also emits the bf16 copy consumed as next step's contraction operand.
# ------------------------------------------------------------------------------
def project_kernel(h_ref, w_ref, b_ref, xf_ref, xb_ref, *, n_valid, n_pad, tm):
    o = (jnp.dot(h_ref[...], w_ref[...], preferred_element_type=jnp.float32)
         - b_ref[...])
    if n_pad != n_valid:
        row = pl.program_id(0) * tm + lax.broadcasted_iota(jnp.int32, o.shape, 0)
        o = jnp.where(row < n_valid, o, 0.0)       # keep padded rows exactly zero
    xf_ref[...] = o
    xb_ref[...] = o.astype(jnp.bfloat16)


# ------------------------------------------------------------------------------
# acp_step (ConcatMP + PCAPassCompressor)
# ------------------------------------------------------------------------------
def acp_step(x_f32, x_bf16, adj_bf16, *, n_valid, f_valid, max_dim, theta):
    n_pad, f_pad = x_f32.shape
    two_f_pad = 2 * f_pad
    d_pad = _round_up(max_dim, _LANE)

    tm = _pick_tile(n_pad, (512, 256))
    tk = _pick_tile(n_pad, (2048, 1024, 512, 256))
    grid_m, grid_k = n_pad // tm, n_pad // tk
    x_resident = n_pad * f_pad * 2 <= _RESIDENT_X_BUDGET

    kern = functools.partial(mp_concat_gram_kernel, f_valid=f_valid,
                             f_pad=f_pad, tk=tk, x_resident=x_resident)

    if x_resident:
        xk_spec = pl.BlockSpec((n_pad, f_pad), lambda i, k: (0, 0))
    else:
        xk_spec = pl.BlockSpec((tk, f_pad), lambda i, k: (k, 0))

    # actual buffer sum (double-buffered inputs/outputs) + headroom, < v7x 64 MiB
    vmem_bytes = (2 * tm * tk * 2
                  + 2 * (n_pad * f_pad * 2 if x_resident else tk * f_pad * 2)
                  + 2 * tm * f_pad * 4
                  + 2 * tm * two_f_pad * 2
                  + 2 * two_f_pad * two_f_pad * 4
                  + 2 * two_f_pad * 4
                  + tm * f_pad * 4)
    vmem_limit = min(vmem_bytes + (16 << 20), 56 << 20)

    flops = 2 * n_pad * n_pad * f_pad + 2 * n_pad * two_f_pad * two_f_pad
    bytes_accessed = (n_pad * n_pad * 2
                      + (n_pad * f_pad * 2 if x_resident
                         else grid_m * n_pad * f_pad * 2)
                      + n_pad * f_pad * 4
                      + n_pad * two_f_pad * 2
                      + grid_m * two_f_pad * two_f_pad * 4)

    h, gram_p, colsum_p = pl.pallas_call(
        kern,
        out_shape=(jax.ShapeDtypeStruct((n_pad, two_f_pad), jnp.bfloat16),
                   jax.ShapeDtypeStruct((grid_m, two_f_pad, two_f_pad), jnp.float32),
                   jax.ShapeDtypeStruct((grid_m, 1, two_f_pad), jnp.float32)),
        grid_spec=pltpu.PrefetchScalarGridSpec(
            num_scalar_prefetch=0,
            grid=(grid_m, grid_k),
            in_specs=[
                pl.BlockSpec((tm, tk), lambda i, k: (i, k)),       # adj tile (bf16)
                xk_spec,                                           # x bf16 (contraction)
                pl.BlockSpec((tm, f_pad), lambda i, k: (i, 0)),    # x f32 (self rows)
            ],
            out_specs=[
                pl.BlockSpec((tm, two_f_pad), lambda i, k: (i, 0)),            # h (bf16)
                pl.BlockSpec((1, two_f_pad, two_f_pad), lambda i, k: (i, 0, 0)),# gram part
                pl.BlockSpec((1, 1, two_f_pad), lambda i, k: (i, 0, 0)),        # colsum part
            ],
            scratch_shapes=[pltpu.VMEM((tm, f_pad), jnp.float32)]),
        compiler_params=pltpu.CompilerParams(
            # row tiles independent (per-tile partial gram/colsum) -> parallel (2 TCs
            # on v7x); contraction axis carries the f32 accumulator -> arbitrary.
            dimension_semantics=("parallel", "arbitrary"),
            vmem_limit_bytes=vmem_limit),
        cost_estimate=pl.CostEstimate(flops=flops, transcendentals=n_pad,
                                      bytes_accessed=bytes_accessed),
    )(adj_bf16, x_bf16, x_f32)

    # ------------------------------- PCA glue -------------------------------
    gram = jnp.sum(gram_p, axis=0)                          # (2F_pad, 2F_pad)
    colsum = jnp.sum(colsum_p, axis=0)[0]                   # (2F_pad,)

    nf = jnp.float32(n_valid)
    valid_idx = jnp.concatenate([jnp.arange(f_valid), f_pad + jnp.arange(f_valid)])
    g_v = gram[valid_idx][:, valid_idx]                     # (2Fv, 2Fv)
    mu_v = colsum[valid_idx] / nf
    var_v = jnp.maximum(jnp.diagonal(g_v) / nf - mu_v * mu_v, 0.0)
    d_v = lax.rsqrt(var_v + _EPS)
    # covariance of the column-normalized h without materializing it:
    #   h_cn = (h - 1 mu^T) D   =>   h_cn^T h_cn = D (G - N mu mu^T) D
    cov = (d_v[:, None] * (g_v - nf * (mu_v[:, None] * mu_v[None, :]))
           * d_v[None, :]) / (nf - 1.0)

    # TODO(synk): SVD / eigendecomposition (feat_prune.PCAPassCompressor) has no
    # Pallas equivalent; computed with jnp.linalg.eigh in plain JAX.
    eigvals, eigvecs = jnp.linalg.eigh(cov)                 # ascending order
    eigvals = eigvals[::-1][:max_dim]
    comps = eigvecs[:, ::-1][:, :max_dim]                   # (2Fv, max_dim)

    # SV thresholding (theta) as a static-shape column mask (theta=0 keeps all).
    sv = jnp.sqrt(jnp.maximum(eigvals, 0.0) * (nf - 1.0))
    keep = (sv > theta).astype(jnp.float32)
    comps = comps * keep[None, :]

    # Fold the column normalization into the projection:
    #   x_new = h_cn @ comps = h @ (D comps) - mu^T (D comps)
    w = d_v[:, None] * comps                                # (2Fv, max_dim)
    b = mu_v @ w                                            # (max_dim,)
    w_full = jnp.zeros((two_f_pad, max_dim), jnp.float32).at[valid_idx].set(w)
    w_p = jnp.pad(w_full, ((0, 0), (0, d_pad - max_dim))).astype(jnp.bfloat16)
    b_p = jnp.pad(b[None, :], ((0, 0), (0, d_pad - max_dim)))

    tmp = _pick_tile(n_pad, (1024, 512, 256))
    proj = functools.partial(project_kernel, n_valid=n_valid, n_pad=n_pad, tm=tmp)
    x_new_f32, x_new_bf16 = pl.pallas_call(
        proj,
        out_shape=(jax.ShapeDtypeStruct((n_pad, d_pad), jnp.float32),
                   jax.ShapeDtypeStruct((n_pad, d_pad), jnp.bfloat16)),
        grid_spec=pltpu.PrefetchScalarGridSpec(
            num_scalar_prefetch=0,
            grid=(n_pad // tmp,),
            in_specs=[
                pl.BlockSpec((tmp, two_f_pad), lambda i: (i, 0)),
                pl.BlockSpec((two_f_pad, d_pad), lambda i: (0, 0)),
                pl.BlockSpec((1, d_pad), lambda i: (0, 0)),
            ],
            out_specs=[pl.BlockSpec((tmp, d_pad), lambda i: (i, 0)),
                       pl.BlockSpec((tmp, d_pad), lambda i: (i, 0))]),
        compiler_params=pltpu.CompilerParams(
            dimension_semantics=("parallel",)),
    )(h, w_p, b_p)
    return x_new_f32, x_new_bf16                            # padded rows/cols are 0


# ------------------------------------------------------------------------------
# PCAPass.forward
# ------------------------------------------------------------------------------
def pcapass_forward(x, adj_ws2t_t, *, num_steps, max_dim, theta=0.0):
    # use_dir_conv=False, adj_wt2s=None, decomposed_layers=1
    n, f = x.shape
    n_pad = _round_up(n, _ROW_ALIGN)
    f_pad = _round_up(f, _LANE)
    x_p = jnp.pad(x.astype(jnp.float32), ((0, n_pad - n), (0, f_pad - f)))

    # adjacency is re-streamed every step / k-tile: keep it bf16 in HBM (halves the
    # dominant O(N^2) DMA bytes; matmul accumulation stays f32).
    # TODO(synk): on v7x the MXU also takes fp8 (e4m3) natively; fp8 adj would halve
    # the adj stream again but needs eigenvalue / theta-threshold validation first.
    adj_p = jnp.pad(adj_ws2t_t.astype(jnp.float32),
                    ((0, n_pad - n), (0, n_pad - n)))
    adj_bf16 = adj_p.astype(jnp.bfloat16)

    x_f32, x_bf16 = standardize(x_p, n_valid=n)   # initial_feature_standardization

    f_valid = f
    for _ in range(num_steps):
        x_f32, x_bf16 = acp_step(x_f32, x_bf16, adj_bf16, n_valid=n,
                                 f_valid=f_valid, max_dim=max_dim, theta=theta)
        f_valid = max_dim
    return x_f32[:n, :max_dim]


if __name__ == "__main__":
    N, F = 64, 32
    MAX_DIM = 32            # keeps feature dim constant across steps
    NUM_STEPS = 2

    key = jax.random.PRNGKey(0)
    k_x, k_a = jax.random.split(key)

    x = jax.random.normal(k_x, (N, F), dtype=jnp.float32)

    # Dense stand-in for the sparse adjacency adj_ws2t_t: random edges + self
    # loops, row-normalized (mean aggregation).
    a = (jax.random.uniform(k_a, (N, N)) < 0.15).astype(jnp.float32)
    a = a + jnp.eye(N, dtype=jnp.float32)
    adj = a / jnp.sum(a, axis=1, keepdims=True)

    fwd = functools.partial(pcapass_forward, num_steps=NUM_STEPS,
                            max_dim=MAX_DIM, theta=0.0)
    out = fwd(x, adj)
    jax.block_until_ready(out)

    assert out.shape == (N, MAX_DIM)
    assert bool(jnp.all(jnp.isfinite(out)))
    print("KERNEL_OK")
</pallas_src>

<mosaic_0001>
module attributes {stable_mosaic.version = 11 : i64} {
  func.func @col_stats_kernel(%arg0: i32, %arg1: memref<256x128xf32, #tpu.memory_space<vmem>>, %arg2: memref<1x128xf32, #tpu.memory_space<vmem>>, %arg3: memref<1x128xf32, #tpu.memory_space<vmem>>) attributes {dimension_semantics = [#tpu.dimension_semantics<arbitrary>], iteration_bounds = array<i64: 1>, scalar_prefetch = 0 : i64, scratch_operands = 0 : i64, tpu.core_type = #tpu.core_type<tc>, window_params = [{transform_indices = @transform_0, window_bounds = array<i64: 256, 128>}, {pipeline_mode = #tpu.pipeline_mode<synchronous>, transform_indices = @transform_1, window_bounds = array<i64: 1, 128>}, {pipeline_mode = #tpu.pipeline_mode<synchronous>, transform_indices = @transform_2, window_bounds = array<i64: 1, 128>}]} {
    %c0_i32 = arith.constant 0 : i32
    %0 = arith.cmpi eq, %arg0, %c0_i32 : i32
    %1 = arith.extui %0 : i1 to i32
    %c0_i32_0 = arith.constant 0 : i32
    %2 = arith.cmpi ne, %1, %c0_i32_0 : i32
    scf.if %2 {
      %cst_11 = arith.constant 0.000000e+00 : f32
      %15 = vector.broadcast %cst_11 : f32 to vector<1x128xf32>
      %c0_12 = arith.constant 0 : index
      %c0_13 = arith.constant 0 : index
      %16 = vector.load %arg2[%c0_12, %c0_13] : memref<1x128xf32, #tpu.memory_space<vmem>>, vector<1x128xf32>
      tpu.vector_store %arg2[%c0_12, %c0_13], %15 {strides = array<i32>} : memref<1x128xf32, #tpu.memory_space<vmem>>, vector<1x128xf32>,
      %cst_14 = arith.constant 0.000000e+00 : f32
      %17 = vector.broadcast %cst_14 : f32 to vector<1x128xf32>
      %c0_15 = arith.constant 0 : index
      %c0_16 = arith.constant 0 : index
      %18 = vector.load %arg3[%c0_15, %c0_16] : memref<1x128xf32, #tpu.memory_space<vmem>>, vector<1x128xf32>
      tpu.vector_store %arg3[%c0_15, %c0_16], %17 {strides = array<i32>} : memref<1x128xf32, #tpu.memory_space<vmem>>, vector<1x128xf32>,
    } else {
    }
    %c0 = arith.constant 0 : index
    %c0_1 = arith.constant 0 : index
    %3 = vector.load %arg1[%c0, %c0_1] : memref<256x128xf32, #tpu.memory_space<vmem>>, vector<256x128xf32>
    %c0_2 = arith.constant 0 : index
    %c0_3 = arith.constant 0 : index
    %4 = vector.load %arg2[%c0_2, %c0_3] : memref<1x128xf32, #tpu.memory_space<vmem>>, vector<1x128xf32>
    %cst = arith.constant dense<0.000000e+00> : vector<128xf32>
    %5 = vector.multi_reduction <add>, %3, %cst [0] : vector<256x128xf32> to vector<128xf32>
    %6 = vector.shape_cast %5 : vector<128xf32> to vector<1x128xf32>
    %7 = arith.addf %4, %6 : vector<1x128xf32>
    %c0_4 = arith.constant 0 : index
    %c0_5 = arith.constant 0 : index
    %8 = vector.load %arg2[%c0_4, %c0_5] : memref<1x128xf32, #tpu.memory_space<vmem>>, vector<1x128xf32>
    tpu.vector_store %arg2[%c0_4, %c0_5], %7 {strides = array<i32>} : memref<1x128xf32, #tpu.memory_space<vmem>>, vector<1x128xf32>,
    %c0_6 = arith.constant 0 : index
    %c0_7 = arith.constant 0 : index
    %9 = vector.load %arg3[%c0_6, %c0_7] : memref<1x128xf32, #tpu.memory_space<vmem>>, vector<1x128xf32>
    %10 = arith.mulf %3, %3 : vector<256x128xf32>
    %cst_8 = arith.constant dense<0.000000e+00> : vector<128xf32>
    %11 = vector.multi_reduction <add>, %10, %cst_8 [0] : vector<256x128xf32> to vector<128xf32>
    %12 = vector.shape_cast %11 : vector<128xf32> to vector<1x128xf32>
    %13 = arith.addf %9, %12 : vector<1x128xf32>
    %c0_9 = arith.constant 0 : index
    %c0_10 = arith.constant 0 : index
    %14 = vector.load %arg3[%c0_9, %c0_10] : memref<1x128xf32, #tpu.memory_space<vmem>>, vector<1x128xf32>
    tpu.vector_store %arg3[%c0_9, %c0_10], %13 {strides = array<i32>} : memref<1x128xf32, #tpu.memory_space<vmem>>, vector<1x128xf32>,
    return
  }
  func.func @transform_0(%arg0: i32) -> (i32, i32) {
    %c0_i32 = arith.constant 0 : i32
    %c0_i32_0 = arith.constant 0 : i32
    return %arg0, %c0_i32 : i32, i32
  }
  func.func @transform_1(%arg0: i32) -> (i32, i32) {
    %c0_i32 = arith.constant 0 : i32
    %c0_i32_0 = arith.constant 0 : i32
    %c0_i32_1 = arith.constant 0 : i32
    return %c0_i32, %c0_i32_0 : i32, i32
  }
  func.func @transform_2(%arg0: i32) -> (i32, i32) {
    %c0_i32 = arith.constant 0 : i32
    %c0_i32_0 = arith.constant 0 : i32
    %c0_i32_1 = arith.constant 0 : i32
    return %c0_i32, %c0_i32_0 : i32, i32
  }
}

</mosaic_0001>

<bundles_post_ra>
// kernel: tpu_custom_call.1
= control target key start
LH: loop header
LB: loop body
LE: loop exit
PB: predicated region body
PF: predicated region fallthrough
CT: control target
= control target key end

     0   :  { %8 = vsyncpa [#allocation3], 0  ;;  %s348_s0 = inlined_call_operand.hbm [shape: f32[256,128], index: 0, kind: input, shape index: {}]   ;;  %s349_s1 = inlined_call_operand.hbm [shape: f32[1,128], index: 1, kind: output, shape index: {0}]   ;;  %s350_s2 = inlined_call_operand.hbm [shape: f32[1,128], index: 2, kind: output, shape index: {1}]  }
   0x1   :  { %9 = vsyncpa [#allocation4], 0 }
   0x2   :  { %10 = vsyncpa [#allocation7], 0  ;;  %s283_s9 = smov [#allocation2]   ;;  %s211_s13 = scalar_lea.hbm %s348_s0, 4096 }
   0x3   :  { %s16_s10 = sshll.u32 %s283_s9, 4  ;;  %p212_p0 = scmp.ne.s32.totalorder %s348_s0, %s211_s13  ;;  %s17_s10 = int_to_ptr.vmem [resolvable:$true] %s16_s10 }
   0x4   :  { %p215_p1 = scmp.lt.u32.totalorder %s211_s13, %s348_s0 }
   0x6   :  { %p217_p2 = pnand %p215_p1, %p212_p0 }
   0x8   :  { %220 = shalt.err (!%p217_p2)
}
   0x9   :  { %s221_s18 = scalar_lea.vmem %s17_s10, 4096  ;;  %p226_p4 = scmp.lt.s32.totalorder %s17_s10, %s17_s10 }
   0xa   :  { %p222_p3 = scmp.ne.s32.totalorder %s17_s10, %s221_s18  ;;  %p227_p5 = scmp.lt.s32.totalorder %s221_s18, %s221_s18 }
   0xc   :  { %p228_p6 = por %p227_p5, %p226_p4 }
   0xe   :  { %p229_p7 = pnand %p228_p6, %p222_p3 }
  0x10   :  { %232 = shalt.err (!%p229_p7)
}
  0x11   :  { %s284_s19 = smov 128   ;;  %s285_s20 = smov 8  }
  0x12   :  { %22 = dma.hbm_to_vmem [thread:$0]  %s348_s0, 4096, %s17_s10, [#allocation3], %s284_s19, %s284_s19, %s285_s20  }
  0x13   :  { %277 = dma.done.wait [#allocation3], 4096  }
  0x14   :  { %278 = vsyncadd [#allocation3], 4294963200  ;;  %v286_v0 = vmov 0.0   ;;  %v32_v1 = vld [vmem:[#allocation2] sm:$0xff]  ;;  %v33_v2 = vld [vmem:[#allocation2 + $0x8] sm:$0xff]  ;;  %s287_s0 = smov [#allocation5]  }
  0x15   :  { %30 = vst [vmem:[#allocation5] sm:$0x1] %v286_v0  ;;  %31 = vst [vmem:[#allocation6] sm:$0x1] %v286_v0  ;;  %v34_v3 = vld [vmem:[#allocation2 + $0x10] sm:$0xff]  ;;  %v35_v4 = vld [vmem:[#allocation2 + $0x18] sm:$0xff]  ;;  %v65_v5 = vadd.f32 %v33_v2, %v32_v1  ;;  %v105_v6 = vmul.f32 %v32_v1, %v32_v1  ;;  %v106_v7 = vmul.f32 %v33_v2, %v33_v2 }
  0x16   :  { %v107_v8 = vmul.f32 %v34_v3, %v34_v3  ;;  %v36_v9 = vld [vmem:[#allocation2 + $0x20] sm:$0xff]  ;;  %v108_v11 = vmul.f32 %v35_v4, %v35_v4  ;;  %v37_v13 = vld [vmem:[#allocation2 + $0x28] sm:$0xff]  ;;  %v38_v17 = vld [vmem:[#allocation2 + $0x30] sm:$0xff]  ;;  %s182_s23 = sshll.u32 %s287_s0, 4  ;;  %s288_s24 = smov [#allocation6]   ;;  %s183_s23 = int_to_ptr.vmem [resolvable:$true] %s182_s23 }
  0x17   :  { %v66_v10 = vadd.f32 %v65_v5, %v34_v3  ;;  %v137_v12 = vadd.f32 %v106_v7, %v105_v6  ;;  %v109_v15 = vmul.f32 %v36_v9, %v36_v9  ;;  %v110_v19 = vmul.f32 %v37_v13, %v37_v13  ;;  %v39_v21 = vld [vmem:[#allocation2 + $0x38] sm:$0xff]  ;;  %v40_v25 = vld [vmem:[#allocation2 + $0x40] sm:$0xff]  ;;  %v41_v29 = vld [vmem:[#allocation2 + $0x48] sm:$0xff]  ;;  %s192_s25 = sshll.u32 %s288_s24, 4  ;;  %s233_s26 = scalar_lea.vmem %s183_s23, 16  ;;  %s316_s25 = int_to_ptr.vmem [resolvable:$true] %s192_s25 }
  0x18   :  { %v111_v23 = vmul.f32 %v38_v17, %v38_v17  ;;  %v112_v27 = vmul.f32 %v39_v21, %v39_v21  ;;  %v113_v31 = vmul.f32 %v40_v25, %v40_v25  ;;  %v42_v33 = vld [vmem:[#allocation2 + $0x50] sm:$0xff]  ;;  %v114_v35 = vmul.f32 %v41_v29, %v41_v29  ;;  %v43_v37 = vld [vmem:[#allocation2 + $0x58] sm:$0xff]  ;;  %v44_v41 = vld [vmem:[#allocation2 + $0x60] sm:$0xff]  ;;  %p234_p8 = scmp.ne.s32.totalorder %s183_s23, %s233_s26  ;;  %s237_s27 = scalar_lea.vmem %s183_s23, 32 }
  0x19   :  { %v67_v14 = vadd.f32 %v66_v10, %v35_v4  ;;  %v138_v16 = vadd.f32 %v137_v12, %v107_v8  ;;  %v115_v39 = vmul.f32 %v42_v33, %v42_v33  ;;  %v116_v43 = vmul.f32 %v43_v37, %v43_v37  ;;  %v45_v45 = vld [vmem:[#allocation2 + $0x68] sm:$0xff]  ;;  %v46_v49 = vld [vmem:[#allocation2 + $0x70] sm:$0xff]  ;;  %v47_v53 = vld [vmem:[#allocation2 + $0x78] sm:$0xff]  ;;  %p238_p9 = scmp.lt.s32.totalorder %s183_s23, %s183_s23  ;;  %p239_p10 = scmp.lt.s32.totalorder %s237_s27, %s233_s26 }
  0x1a   :  { %v117_v47 = vmul.f32 %v44_v41, %v44_v41  ;;  %v118_v51 = vmul.f32 %v45_v45, %v45_v45  ;;  %v119_v55 = vmul.f32 %v46_v49, %v46_v49  ;;  %v48_v57 = vld [vmem:[#allocation2 + $0x80] sm:$0xff]  ;;  %v120_v59 = vmul.f32 %v47_v53, %v47_v53  ;;  %v49_v61 = vld [vmem:[#allocation2 + $0x88] sm:$0xff]  ;;  %v50_v1 = vld [vmem:[#allocation2 + $0x90] sm:$0xff] }
  0x1b   :  { %v68_v18 = vadd.f32 %v67_v14, %v36_v9  ;;  %v139_v20 = vadd.f32 %v138_v16, %v108_v11  ;;  %v121_v63 = vmul.f32 %v48_v57, %v48_v57  ;;  %v122_v3 = vmul.f32 %v49_v61, %v49_v61  ;;  %v51_v5 = vld [vmem:[#allocation2 + $0x98] sm:$0xff]  ;;  %v52_v9 = vld [vmem:[#allocation2 + $0xa0] sm:$0xff]  ;;  %p240_p11 = por %p239_p10, %p238_p9 }
  0x1c   :  { %v123_v7 = vmul.f32 %v50_v1, %v50_v1  ;;  %v124_v11 = vmul.f32 %v51_v5, %v51_v5 }
  0x1d   :  { %v69_v22 = vadd.f32 %v68_v18, %v37_v13  ;;  %v140_v24 = vadd.f32 %v139_v20, %v109_v15  ;;  %v53_v13 = vld [vmem:[#allocation2 + $0xa8] sm:$0xff]  ;;  %v125_v15 = vmul.f32 %v52_v9, %v52_v9  ;;  %p241_p12 = pnand %p240_p11, %p234_p8 }
  0x1f   :  { %v70_v26 = vadd.f32 %v69_v22, %v38_v17  ;;  %v141_v28 = vadd.f32 %v140_v24, %v110_v19  ;;  %v54_v17 = vld [vmem:[#allocation2 + $0xb0] sm:$0xff]  ;;  %v126_v19 = vmul.f32 %v53_v13, %v53_v13 }
  0x21   :  { %v71_v30 = vadd.f32 %v70_v26, %v39_v21  ;;  %v142_v32 = vadd.f32 %v141_v28, %v111_v23  ;;  %v55_v21 = vld [vmem:[#allocation2 + $0xb8] sm:$0xff]  ;;  %v127_v23 = vmul.f32 %v54_v17, %v54_v17 }
  0x23   :  { %v72_v34 = vadd.f32 %v71_v30, %v40_v25  ;;  %v143_v36 = vadd.f32 %v142_v32, %v112_v27  ;;  %v56_v25 = vld [vmem:[#allocation2 + $0xc0] sm:$0xff]  ;;  %v128_v27 = vmul.f32 %v55_v21, %v55_v21 }
  0x25   :  { %v73_v38 = vadd.f32 %v72_v34, %v41_v29  ;;  %v144_v40 = vadd.f32 %v143_v36, %v113_v31  ;;  %v57_v29 = vld [vmem:[#allocation2 + $0xc8] sm:$0xff]  ;;  %v129_v31 = vmul.f32 %v56_v25, %v56_v25 }
  0x27   :  { %v74_v42 = vadd.f32 %v73_v38, %v42_v33  ;;  %v145_v44 = vadd.f32 %v144_v40, %v114_v35  ;;  %v58_v33 = vld [vmem:[#allocation2 + $0xd0] sm:$0xff]  ;;  %v130_v35 = vmul.f32 %v57_v29, %v57_v29 }
  0x29   :  { %v75_v46 = vadd.f32 %v74_v42, %v43_v37  ;;  %v146_v48 = vadd.f32 %v145_v44, %v115_v39  ;;  %v59_v37 = vld [vmem:[#allocation2 + $0xd8] sm:$0xff]  ;;  %v131_v39 = vmul.f32 %v58_v33, %v58_v33 }
  0x2b   :  { %v76_v50 = vadd.f32 %v75_v46, %v44_v41  ;;  %v147_v52 = vadd.f32 %v146_v48, %v116_v43  ;;  %v60_v41 = vld [vmem:[#allocation2 + $0xe0] sm:$0xff]  ;;  %v132_v43 = vmul.f32 %v59_v37, %v59_v37 }
  0x2d   :  { %v77_v54 = vadd.f32 %v76_v50, %v45_v45  ;;  %v148_v56 = vadd.f32 %v147_v52, %v117_v47  ;;  %v61_v45 = vld [vmem:[#allocation2 + $0xe8] sm:$0xff]  ;;  %v133_v47 = vmul.f32 %v60_v41, %v60_v41 }
  0x2f   :  { %v78_v58 = vadd.f32 %v77_v54, %v46_v49  ;;  %v149_v60 = vadd.f32 %v148_v56, %v118_v51  ;;  %v62_v49 = vld [vmem:[#allocation2 + $0xf0] sm:$0xff]  ;;  %v134_v51 = vmul.f32 %v61_v45, %v61_v45 }
  0x31   :  { %v79_v62 = vadd.f32 %v78_v58, %v47_v53  ;;  %v150_v0 = vadd.f32 %v149_v60, %v119_v55  ;;  %v63_v53 = vld [vmem:[#allocation2 + $0xf8] sm:$0xff]  ;;  %v135_v55 = vmul.f32 %v62_v49, %v62_v49 }
  0x32   :  { %v136_v58 = vmul.f32 %v63_v53, %v63_v53 }
  0x33   :  { %v80_v2 = vadd.f32 %v79_v62, %v48_v57  ;;  %v151_v4 = vadd.f32 %v150_v0, %v120_v59 }
  0x35   :  { %v81_v6 = vadd.f32 %v80_v2, %v49_v61  ;;  %v152_v8 = vadd.f32 %v151_v4, %v121_v63 }
  0x37   :  { %v82_v10 = vadd.f32 %v81_v6, %v50_v1  ;;  %v153_v12 = vadd.f32 %v152_v8, %v122_v3 }
  0x39   :  { %v83_v14 = vadd.f32 %v82_v10, %v51_v5  ;;  %v154_v16 = vadd.f32 %v153_v12, %v123_v7  ;;  %v64_v7 = vld [vmem:[#allocation5] sm:$0x1]  ;;  %v104_v12 = vld [vmem:[#allocation6] sm:$0x1] }
  0x3b   :  { %v84_v18 = vadd.f32 %v83_v14, %v52_v9  ;;  %v155_v20 = vadd.f32 %v154_v16, %v124_v11 }
  0x3d   :  { %v85_v22 = vadd.f32 %v84_v18, %v53_v13  ;;  %v156_v24 = vadd.f32 %v155_v20, %v125_v15 }
  0x3f   :  { %v86_v26 = vadd.f32 %v85_v22, %v54_v17  ;;  %v157_v28 = vadd.f32 %v156_v24, %v126_v19 }
  0x41   :  { %v87_v30 = vadd.f32 %v86_v26, %v55_v21  ;;  %v158_v32 = vadd.f32 %v157_v28, %v127_v23 }
  0x43   :  { %v88_v34 = vadd.f32 %v87_v30, %v56_v25  ;;  %v159_v36 = vadd.f32 %v158_v32, %v128_v27 }
  0x45   :  { %v89_v38 = vadd.f32 %v88_v34, %v57_v29  ;;  %v160_v40 = vadd.f32 %v159_v36, %v129_v31 }
  0x47   :  { %v90_v42 = vadd.f32 %v89_v38, %v58_v33  ;;  %v161_v44 = vadd.f32 %v160_v40, %v130_v35 }
  0x49   :  { %v91_v46 = vadd.f32 %v90_v42, %v59_v37  ;;  %v162_v48 = vadd.f32 %v161_v44, %v131_v39 }
  0x4b   :  { %v92_v50 = vadd.f32 %v91_v46, %v60_v41  ;;  %v163_v52 = vadd.f32 %v162_v48, %v132_v43 }
  0x4d   :  { %v93_v54 = vadd.f32 %v92_v50, %v61_v45  ;;  %v164_v56 = vadd.f32 %v163_v52, %v133_v47 }
  0x4f   :  { %v94_v57 = vadd.f32 %v93_v54, %v62_v49  ;;  %v165_v59 = vadd.f32 %v164_v56, %v134_v51 }
  0x51   :  { %v95_v60 = vadd.f32 %v94_v57, %v63_v53  ;;  %v166_v61 = vadd.f32 %v165_v59, %v135_v55 }
  0x53   :  { %v96_v62 = vrot.slane %v95_v60, 4  ;;  %v167_v63 = vadd.f32 %v166_v61, %v136_v58 }
  0x55   :  { %v97_v0 = vadd.f32 %v96_v62, %v95_v60  ;;  %v168_v1 = vrot.slane %v167_v63, 4 }
  0x57   :  { %v98_v2 = vrot.slane %v97_v0, 2  ;;  %v169_v3 = vadd.f32 %v168_v1, %v167_v63 }
  0x59   :  { %v99_v4 = vadd.f32 %v98_v2, %v97_v0  ;;  %v170_v5 = vrot.slane %v169_v3, 2 }
  0x5b   :  { %v100_v6 = vrot.slane %v99_v4, 1  ;;  %v171_v8 = vadd.f32 %v170_v5, %v169_v3 }
  0x5d   :  { %v101_v9 = vadd.f32 %v100_v6, %v99_v4  ;;  %v172_v10 = vrot.slane %v171_v8, 1 }
  0x5f   :  { %v102_v11 = vadd.f32 %v101_v9, %v64_v7  ;;  %v173_v13 = vadd.f32 %v172_v10, %v171_v8 }
  0x61   :  { %103 = vst [vmem:[#allocation5] sm:$0x1] %v102_v11  ;;  %v174_v14 = vadd.f32 %v173_v13, %v104_v12 }
  0x62   :  { %244 = shalt.err (!%p241_p12)
}
  0x63   :  { %s245_s30 = scalar_lea.hbm %s349_s1, 16 }
  0x64   :  { %p246_p13 = scmp.ne.s32.totalorder %s349_s1, %s245_s30  ;;  %p249_p0 = scmp.lt.u32.totalorder %s245_s30, %s349_s1 }
  0x66   :  { %p251_p1 = pnand %p249_p0, %p246_p13 }
  0x68   :  { %254 = shalt.err (!%p251_p1)
}
  0x69   :  { %185 = dma.vmem_to_hbm [thread:$0]  %s183_s23, 16, %s349_s1, [#allocation4]   ;;  %175 = vst [vmem:[#allocation6] sm:$0x1] %v174_v14 }
  0x6a   :  { %s255_s9 = scalar_lea.vmem %s316_s25, 16  ;;  %s259_s10 = scalar_lea.vmem %s316_s25, 32 }
  0x6b   :  { %p256_p2 = scmp.ne.s32.totalorder %s316_s25, %s255_s9  ;;  %p260_p3 = scmp.lt.s32.totalorder %s316_s25, %s316_s25 }
  0x6c   :  { %p261_p4 = scmp.lt.s32.totalorder %s259_s10, %s255_s9 }
  0x6e   :  { %p262_p5 = por %p261_p4, %p260_p3 }
  0x70   :  { %p263_p6 = pnand %p262_p5, %p256_p2 }
  0x72   :  { %266 = shalt.err (!%p263_p6)
}
  0x73   :  { %s267_s13 = scalar_lea.hbm %s350_s2, 16 }
  0x74   :  { %p268_p7 = scmp.ne.s32.totalorder %s350_s2, %s267_s13  ;;  %p271_p8 = scmp.lt.u32.totalorder %s267_s13, %s350_s2 }
  0x76   :  { %p273_p9 = pnand %p271_p8, %p268_p7 }
  0x78   :  { %276 = shalt.err (!%p273_p9)
}
  0x79   :  { %195 = dma.vmem_to_hbm [thread:$0]  %s316_s25, 16, %s350_s2, [#allocation7]  }
  0x7a   :  { %279 = dma.done.wait [#allocation4], 16  }
  0x7b   :  { %280 = vsyncadd [#allocation4], 4294967280 }
  0x7c   :  { %281 = dma.done.wait [#allocation7], 16  }
  0x7d   :  { %282 = vsyncadd [#allocation7], 4294967280 }
  0x7e   :  { %202 = vsyncpa [#allocation3], 1 }
  0x7f   :  { %203 = vsyncpa [#allocation4], 1 }
  0x80   :  { %204 = vsyncpa [#allocation7], 1 }

</bundles_post_ra>
